<compile_context>
chip_gen: v7x
topology: tpu7x:2x2x1
jax: 0.10.0
libtpu: 0.0.40
codegen_flags: <defaults>
</compile_context>

<pallas_src>
import jax
import jax.numpy as jnp
from jax.experimental import pallas as pl
from jax.experimental.pallas import tpu as pltpu


def _round_up(x, m):
    return (x + m - 1) // m * m


def _residual_block_kernel(x_ref, wcat_ref, b1_ref, w2_ref, bout_ref, o_ref, acc_ref):
    """Grid = (batch tiles, K tiles); K is the trailing 'arbitrary' reduction axis.

    acc_ref accumulates the fused first GEMM [h_pre | shortcut] in f32 across K.
    On the last K step: +b1, ReLU, second GEMM (W2), residual add, folded bias,
    one unmasked lane-dense store.
    """
    k = pl.program_id(1)
    Dp = o_ref.shape[-1]                                       # padded Dout

    @pl.when(k == 0)
    def _():
        acc_ref[...] = jnp.zeros_like(acc_ref)

    # One GEMM feeds both branches: (bm, tk) @ (tk, 2*Dp) -> (bm, 2*Dp).
    x = x_ref[...].astype(wcat_ref.dtype)
    acc_ref[...] += jnp.dot(x, wcat_ref[...], preferred_element_type=jnp.float32)

    @pl.when(k == pl.num_programs(1) - 1)
    def _():
        hs = acc_ref[...]
        h = jnp.maximum(hs[:, :Dp] + b1_ref[...], 0.0)         # block branch: +b1, ReLU
        sc = hs[:, Dp:]                                        # shortcut branch
        out = jnp.dot(h.astype(w2_ref.dtype), w2_ref[...],
                      preferred_element_type=jnp.float32)      # (bm, Dp)
        # single folded bias = b2 + b_shortcut
        o_ref[...] = (out + sc + bout_ref[...]).astype(o_ref.dtype)


def pack_residual_block_params(w1, b1, w2, b2, ws=None, bs=None, *,
                               weight_dtype=jnp.bfloat16, tk_max=512):
    """Pad / fuse / cast the weights ONCE (call at init time and cache the result).

    w1: (Din, Dout)  block[0] Linear      (stored transposed: x @ W)
    w2: (Dout, Dout) block[2] Linear
    ws: (Din, Dout)  shortcut Linear, or None for the Identity shortcut
                     (input_size == output_size) — folded in as an identity matrix.
    b1 / b2 / bs: (1, Dout)
    """
    Din, Dout = w1.shape
    if ws is None:
        assert Din == Dout, "Identity shortcut requires input_size == output_size"
        # TODO(synk): a dedicated kernel path could skip this (cheap) identity GEMM.
        ws = jnp.eye(Din, dtype=w1.dtype)
        bs = jnp.zeros((1, Dout), dtype=w1.dtype)

    w_dt = weight_dtype

    # Lane / MXU alignment: 256-granular when wide enough to feed the v6e/v7x
    # 256x256 MXU, 128 otherwise (v5e 128x128 MXU; tiny layers).
    lane = 256 if Dout >= 256 else 128
    Dp = _round_up(Dout, lane)
    tk = min(_round_up(Din, 128), tk_max)      # K chunk streamed per grid step
    Kp = _round_up(Din, tk)

    w1p = jnp.zeros((Kp, Dp), w_dt).at[:Din, :Dout].set(w1.astype(w_dt))
    wsp = jnp.zeros((Kp, Dp), w_dt).at[:Din, :Dout].set(ws.astype(w_dt))
    wcat = jnp.concatenate([w1p, wsp], axis=1)                      # (Kp, 2*Dp)
    w2p = jnp.zeros((Dp, Dp), w_dt).at[:Dout, :Dout].set(w2.astype(w_dt))

    b1p = jnp.zeros((1, Dp), jnp.float32).at[:, :Dout].set(b1.astype(jnp.float32))
    boutp = jnp.zeros((1, Dp), jnp.float32).at[:, :Dout].set(
        (b2 + bs).astype(jnp.float32))                              # folded b2 + b_shortcut

    # TODO(synk): for extremely wide layers (Dout >> 4k) also stream W2 over an
    # N/K grid axis instead of keeping the (Dp, Dp) slab resident.
    return dict(wcat=wcat, w2=w2p, b1=b1p, bout=boutp,
                Din=Din, Dout=Dout, Kp=Kp, Dp=Dp, tk=tk)


def residual_block_apply(params, x, *, bm_max=256):
    """Forward pass. x: (B, Din) -> (B, Dout)."""
    B, Din = x.shape
    assert Din == params["Din"], "input feature size mismatch"
    Dout, Kp, Dp, tk = params["Dout"], params["Kp"], params["Dp"], params["tk"]
    wcat, w2p, b1p, boutp = params["wcat"], params["w2"], params["b1"], params["bout"]

    # --- batch tiling: minimal overpadding, >=2 grid steps when possible -----
    sub = 8 if jnp.dtype(x.dtype).itemsize >= 4 else 16
    n_tiles = pl.cdiv(B, bm_max)
    if n_tiles == 1 and B >= 2 * sub:
        n_tiles = 2                     # both v7x TensorCores get a batch tile
    bm = _round_up(pl.cdiv(B, n_tiles), sub)
    Bp = _round_up(B, bm)               # overpad < one tile (never a full bm_max)

    # --- pad activations only when actually needed ---------------------------
    if (B, Din) != (Bp, Kp):
        xp = jnp.zeros((Bp, Kp), x.dtype).at[:B, :Din].set(x)
    else:
        xp = x

    grid = (Bp // bm, Kp // tk)

    # --- scoped-VMEM budget (explicit, with headroom, capped below v7x 64 MiB)
    xb = jnp.dtype(x.dtype).itemsize
    wb = jnp.dtype(wcat.dtype).itemsize
    est = (2 * bm * tk * xb              # x tiles (double-buffered)
           + 2 * tk * 2 * Dp * wb        # streamed [W1|Ws] K-chunks (double-buffered)
           + 2 * Dp * Dp * wb            # W2 (worst case double-buffered)
           + 4 * 2 * Dp * 4              # biases
           + 2 * bm * Dp * xb            # output tiles
           + bm * 2 * Dp * 4)            # f32 accumulator scratch
    vmem_limit = int(min(48 << 20, max(32 << 20, est + (4 << 20))))

    def _build(single_buffer_weights):
        pm = {"pipeline_mode": pl.Buffered(1)} if single_buffer_weights else {}
        return pl.pallas_call(
            _residual_block_kernel,
            out_shape=jax.ShapeDtypeStruct((Bp, Dp), x.dtype),
            grid_spec=pltpu.PrefetchScalarGridSpec(
                num_scalar_prefetch=0,
                grid=grid,
                in_specs=[
                    pl.BlockSpec((bm, tk), lambda i, k: (i, k)),        # x
                    pl.BlockSpec((tk, 2 * Dp), lambda i, k: (k, 0)),    # [W1 | W_sc], streamed over K
                    pl.BlockSpec((1, Dp), lambda i, k: (0, 0), **pm),   # b1 (grid-invariant)
                    pl.BlockSpec((Dp, Dp), lambda i, k: (0, 0), **pm),  # W2 (grid-invariant)
                    pl.BlockSpec((1, Dp), lambda i, k: (0, 0), **pm),   # b2 + b_shortcut (folded)
                ],
                out_specs=pl.BlockSpec((bm, Dp), lambda i, k: (i, 0)),  # lane-dense output slab
                scratch_shapes=[pltpu.VMEM((bm, 2 * Dp), jnp.float32)],
            ),
            compiler_params=pltpu.CompilerParams(
                dimension_semantics=("parallel", "arbitrary"),
                vmem_limit_bytes=vmem_limit),
        )

    try:
        out = _build(True)(xp, wcat, b1p, w2p, boutp)
    except Exception:
        # Fallback if this jax/Mosaic build rejects single-buffering (Buffered(1)):
        # default double-buffering — only costs extra VMEM, semantics identical.
        out = _build(False)(xp, wcat, b1p, w2p, boutp)

    if (Bp, Dp) != (B, Dout):
        out = out[:B, :Dout]
    return out


def _torch_linear_init(key, fan_in, fan_out, dtype=jnp.float32):
    """Deterministic init mimicking nn.Linear default: U(-1/sqrt(fan_in), +)."""
    kw, kb = jax.random.split(key)
    bound = 1.0 / jnp.sqrt(fan_in)
    # stored transposed: (fan_in, fan_out) so the kernel computes x @ W
    w = jax.random.uniform(kw, (fan_in, fan_out), dtype, -bound, bound)
    b = jax.random.uniform(kb, (1, fan_out), dtype, -bound, bound)
    return w, b


if __name__ == "__main__":
    # _ResidualBlock(input_size=32, output_size=64, use_batch_norm=False)
    # TODO(synk): BatchNorm1d branch (use_batch_norm=True) not implemented;
    # this kernel reproduces the default nn.Identity() norm path.
    B, Din, Dout = 8, 32, 64

    key = jax.random.PRNGKey(0)
    kx, k1, k2, ks = jax.random.split(key, 4)

    x = jax.random.normal(kx, (B, Din), jnp.float32)
    w1, b1 = _torch_linear_init(k1, Din, Dout)   # block[0]: Linear(Din, Dout)
    w2, b2 = _torch_linear_init(k2, Dout, Dout)  # block[2]: Linear(Dout, Dout)
    ws, bs = _torch_linear_init(ks, Din, Dout)   # shortcut: Linear(Din, Dout)

    # Pure-JAX reference of the forward semantics.
    ref = (jnp.maximum(x @ w1 + b1, 0.0) @ w2 + b2) + (x @ ws + bs)

    # 1) f32 weights: tight reference check.
    params_f32 = pack_residual_block_params(w1, b1, w2, b2, ws, bs,
                                            weight_dtype=jnp.float32)
    out_f32 = jax.block_until_ready(residual_block_apply(params_f32, x))
    assert out_f32.shape == (B, Dout)
    assert jnp.allclose(out_f32, ref, atol=1e-5, rtol=1e-5)

    # 2) bf16 weights (recommended production default): f32 accumulation on the
    #    MXU, so only input-rounding error remains — check with bf16 tolerance.
    params_bf16 = pack_residual_block_params(w1, b1, w2, b2, ws, bs)
    out_bf16 = jax.block_until_ready(residual_block_apply(params_bf16, x))
    assert out_bf16.shape == (B, Dout)
    assert jnp.allclose(out_bf16, ref, atol=3e-2, rtol=3e-2)

    print("KERNEL_OK")
</pallas_src>

<mosaic_0001>
module attributes {stable_mosaic.version = 11 : i64} {
  func.func @_residual_block_kernel(%arg0: i32, %arg1: i32, %arg2: memref<8x128xf32, #tpu.memory_space<vmem>>, %arg3: memref<128x256xf32, #tpu.memory_space<vmem>>, %arg4: memref<1x128xf32, #tpu.memory_space<vmem>>, %arg5: memref<128x128xf32, #tpu.memory_space<vmem>>, %arg6: memref<1x128xf32, #tpu.memory_space<vmem>>, %arg7: memref<8x128xf32, #tpu.memory_space<vmem>>, %arg8: memref<8x256xf32, #tpu.memory_space<vmem>>) attributes {dimension_semantics = [#tpu.dimension_semantics<parallel>, #tpu.dimension_semantics<arbitrary>], iteration_bounds = array<i64: 1, 1>, scalar_prefetch = 0 : i64, scratch_operands = 1 : i64, tpu.core_type = #tpu.core_type<tc>, window_params = [{transform_indices = @transform_0, window_bounds = array<i64: 8, 128>}, {transform_indices = @transform_1, window_bounds = array<i64: 128, 256>}, {pipeline_mode = #tpu.pipeline_mode<synchronous>, transform_indices = @transform_2, window_bounds = array<i64: 1, 128>}, {pipeline_mode = #tpu.pipeline_mode<synchronous>, transform_indices = @transform_3, window_bounds = array<i64: 128, 128>}, {pipeline_mode = #tpu.pipeline_mode<synchronous>, transform_indices = @transform_4, window_bounds = array<i64: 1, 128>}, {transform_indices = @transform_5, window_bounds = array<i64: 8, 128>}]} {
    %c0_i32 = arith.constant 0 : i32
    %0 = arith.cmpi eq, %arg1, %c0_i32 : i32
    %1 = arith.extui %0 : i1 to i32
    %c0_i32_0 = arith.constant 0 : i32
    %2 = arith.cmpi ne, %1, %c0_i32_0 : i32
    scf.if %2 {
      %cst_10 = arith.constant 0.000000e+00 : f32
      %12 = vector.broadcast %cst_10 : f32 to vector<8x256xf32>
      %c0_11 = arith.constant 0 : index
      %c0_12 = arith.constant 0 : index
      %13 = vector.load %arg8[%c0_11, %c0_12] : memref<8x256xf32, #tpu.memory_space<vmem>>, vector<8x256xf32>
      tpu.vector_store %arg8[%c0_11, %c0_12], %12 {strides = array<i32>} : memref<8x256xf32, #tpu.memory_space<vmem>>, vector<8x256xf32>,
    } else {
    }
    %c0 = arith.constant 0 : index
    %c0_1 = arith.constant 0 : index
    %3 = vector.load %arg2[%c0, %c0_1] : memref<8x128xf32, #tpu.memory_space<vmem>>, vector<8x128xf32>
    %c0_2 = arith.constant 0 : index
    %c0_3 = arith.constant 0 : index
    %4 = vector.load %arg8[%c0_2, %c0_3] : memref<8x256xf32, #tpu.memory_space<vmem>>, vector<8x256xf32>
    %c0_4 = arith.constant 0 : index
    %c0_5 = arith.constant 0 : index
    %5 = vector.load %arg3[%c0_4, %c0_5] : memref<128x256xf32, #tpu.memory_space<vmem>>, vector<128x256xf32>
    %cst = arith.constant dense<0.000000e+00> : vector<8x256xf32>
    %6 = tpu.matmul %3, %5, %cst {dimension_numbers = #tpu.dot_dimension_numbers<[1], [0], [0], [1], [0, 0, 1, 1], [], []>} : vector<8x128xf32>, vector<128x256xf32>, vector<8x256xf32> -> vector<8x256xf32>
    %7 = arith.addf %4, %6 : vector<8x256xf32>
    %c0_6 = arith.constant 0 : index
    %c0_7 = arith.constant 0 : index
    %8 = vector.load %arg8[%c0_6, %c0_7] : memref<8x256xf32, #tpu.memory_space<vmem>>, vector<8x256xf32>
    tpu.vector_store %arg8[%c0_6, %c0_7], %7 {strides = array<i32>} : memref<8x256xf32, #tpu.memory_space<vmem>>, vector<8x256xf32>,
    %c0_i32_8 = arith.constant 0 : i32
    %9 = arith.cmpi eq, %arg1, %c0_i32_8 : i32
    %10 = arith.extui %9 : i1 to i32
    %c0_i32_9 = arith.constant 0 : i32
    %11 = arith.cmpi ne, %10, %c0_i32_9 : i32
    scf.if %11 {
      %c0_10 = arith.constant 0 : index
      %c0_11 = arith.constant 0 : index
      %12 = vector.load %arg8[%c0_10, %c0_11] : memref<8x256xf32, #tpu.memory_space<vmem>>, vector<8x256xf32>
      %13 = vector.extract_strided_slice %12 {offsets = [0, 0], sizes = [8, 128], strides = [1, 1]} : vector<8x256xf32> to vector<8x128xf32>
      %c0_12 = arith.constant 0 : index
      %c0_13 = arith.constant 0 : index
      %14 = vector.load %arg4[%c0_12, %c0_13] : memref<1x128xf32, #tpu.memory_space<vmem>>, vector<1x128xf32>
      %15 = vector.broadcast %14 : vector<1x128xf32> to vector<8x128xf32>
      %16 = arith.addf %13, %15 : vector<8x128xf32>
      %cst_14 = arith.constant 0.000000e+00 : f32
      %17 = vector.broadcast %cst_14 : f32 to vector<8x128xf32>
      %18 = arith.maximumf %16, %17 : vector<8x128xf32>
      %19 = vector.extract_strided_slice %12 {offsets = [0, 128], sizes = [8, 128], strides = [1, 1]} : vector<8x256xf32> to vector<8x128xf32>
      %c0_15 = arith.constant 0 : index
      %c0_16 = arith.constant 0 : index
      %20 = vector.load %arg5[%c0_15, %c0_16] : memref<128x128xf32, #tpu.memory_space<vmem>>, vector<128x128xf32>
      %cst_17 = arith.constant dense<0.000000e+00> : vector<8x128xf32>
      %21 = tpu.matmul %18, %20, %cst_17 {dimension_numbers = #tpu.dot_dimension_numbers<[1], [0], [0], [1], [0, 0, 1, 1], [], []>} : vector<8x128xf32>, vector<128x128xf32>, vector<8x128xf32> -> vector<8x128xf32>
      %22 = arith.addf %21, %19 : vector<8x128xf32>
      %c0_18 = arith.constant 0 : index
      %c0_19 = arith.constant 0 : index
      %23 = vector.load %arg6[%c0_18, %c0_19] : memref<1x128xf32, #tpu.memory_space<vmem>>, vector<1x128xf32>
      %24 = vector.broadcast %23 : vector<1x128xf32> to vector<8x128xf32>
      %25 = arith.addf %22, %24 : vector<8x128xf32>
      %c0_20 = arith.constant 0 : index
      %c0_21 = arith.constant 0 : index
      %26 = vector.load %arg7[%c0_20, %c0_21] : memref<8x128xf32, #tpu.memory_space<vmem>>, vector<8x128xf32>
      tpu.vector_store %arg7[%c0_20, %c0_21], %25 {strides = array<i32>} : memref<8x128xf32, #tpu.memory_space<vmem>>, vector<8x128xf32>,
    } else {
    }
    return
  }
  func.func @transform_0(%arg0: i32, %arg1: i32) -> (i32, i32) {
    %c0_i32 = arith.constant 0 : i32
    return %arg0, %arg1 : i32, i32
  }
  func.func @transform_1(%arg0: i32, %arg1: i32) -> (i32, i32) {
    %c0_i32 = arith.constant 0 : i32
    %c0_i32_0 = arith.constant 0 : i32
    return %arg1, %c0_i32 : i32, i32
  }
  func.func @transform_2(%arg0: i32, %arg1: i32) -> (i32, i32) {
    %c0_i32 = arith.constant 0 : i32
    %c0_i32_0 = arith.constant 0 : i32
    %c0_i32_1 = arith.constant 0 : i32
    return %c0_i32, %c0_i32_0 : i32, i32
  }
  func.func @transform_3(%arg0: i32, %arg1: i32) -> (i32, i32) {
    %c0_i32 = arith.constant 0 : i32
    %c0_i32_0 = arith.constant 0 : i32
    %c0_i32_1 = arith.constant 0 : i32
    return %c0_i32, %c0_i32_0 : i32, i32
  }
  func.func @transform_4(%arg0: i32, %arg1: i32) -> (i32, i32) {
    %c0_i32 = arith.constant 0 : i32
    %c0_i32_0 = arith.constant 0 : i32
    %c0_i32_1 = arith.constant 0 : i32
    return %c0_i32, %c0_i32_0 : i32, i32
  }
  func.func @transform_5(%arg0: i32, %arg1: i32) -> (i32, i32) {
    %c0_i32 = arith.constant 0 : i32
    %c0_i32_0 = arith.constant 0 : i32
    return %arg0, %c0_i32 : i32, i32
  }
}

module attributes {stable_mosaic.version = 11 : i64} {
  func.func @_residual_block_kernel(%arg0: i32, %arg1: i32, %arg2: memref<8x128xf32, #tpu.memory_space<vmem>>, %arg3: memref<128x256xf32, #tpu.memory_space<vmem>>, %arg4: memref<1x128xf32, #tpu.memory_space<vmem>>, %arg5: memref<128x128xf32, #tpu.memory_space<vmem>>, %arg6: memref<1x128xf32, #tpu.memory_space<vmem>>, %arg7: memref<8x128xf32, #tpu.memory_space<vmem>>, %arg8: memref<8x256xf32, #tpu.memory_space<vmem>>) attributes {dimension_semantics = [#tpu.dimension_semantics<parallel>, #tpu.dimension_semantics<arbitrary>], iteration_bounds = array<i64: 1, 1>, scalar_prefetch = 0 : i64, scratch_operands = 1 : i64, tpu.core_type = #tpu.core_type<tc>, window_params = [{transform_indices = @transform_0, window_bounds = array<i64: 8, 128>}, {transform_indices = @transform_1, window_bounds = array<i64: 128, 256>}, {pipeline_mode = #tpu.pipeline_mode<synchronous>, transform_indices = @transform_2, window_bounds = array<i64: 1, 128>}, {pipeline_mode = #tpu.pipeline_mode<synchronous>, transform_indices = @transform_3, window_bounds = array<i64: 128, 128>}, {pipeline_mode = #tpu.pipeline_mode<synchronous>, transform_indices = @transform_4, window_bounds = array<i64: 1, 128>}, {transform_indices = @transform_5, window_bounds = array<i64: 8, 128>}]} {
    %c0_i32 = arith.constant 0 : i32
    %0 = arith.cmpi eq, %arg1, %c0_i32 : i32
    %1 = arith.extui %0 : i1 to i32
    %c0_i32_0 = arith.constant 0 : i32
    %2 = arith.cmpi ne, %1, %c0_i32_0 : i32
    scf.if %2 {
      %cst_10 = arith.constant 0.000000e+00 : f32
      %12 = vector.broadcast %cst_10 : f32 to vector<8x256xf32>
      %c0_11 = arith.constant 0 : index
      %c0_12 = arith.constant 0 : index
      %13 = vector.load %arg8[%c0_11, %c0_12] : memref<8x256xf32, #tpu.memory_space<vmem>>, vector<8x256xf32>
      tpu.vector_store %arg8[%c0_11, %c0_12], %12 {strides = array<i32>} : memref<8x256xf32, #tpu.memory_space<vmem>>, vector<8x256xf32>,
    } else {
    }
    %c0 = arith.constant 0 : index
    %c0_1 = arith.constant 0 : index
    %3 = vector.load %arg2[%c0, %c0_1] : memref<8x128xf32, #tpu.memory_space<vmem>>, vector<8x128xf32>
    %c0_2 = arith.constant 0 : index
    %c0_3 = arith.constant 0 : index
    %4 = vector.load %arg8[%c0_2, %c0_3] : memref<8x256xf32, #tpu.memory_space<vmem>>, vector<8x256xf32>
    %c0_4 = arith.constant 0 : index
    %c0_5 = arith.constant 0 : index
    %5 = vector.load %arg3[%c0_4, %c0_5] : memref<128x256xf32, #tpu.memory_space<vmem>>, vector<128x256xf32>
    %cst = arith.constant dense<0.000000e+00> : vector<8x256xf32>
    %6 = tpu.matmul %3, %5, %cst {dimension_numbers = #tpu.dot_dimension_numbers<[1], [0], [0], [1], [0, 0, 1, 1], [], []>} : vector<8x128xf32>, vector<128x256xf32>, vector<8x256xf32> -> vector<8x256xf32>
    %7 = arith.addf %4, %6 : vector<8x256xf32>
    %c0_6 = arith.constant 0 : index
    %c0_7 = arith.constant 0 : index
    %8 = vector.load %arg8[%c0_6, %c0_7] : memref<8x256xf32, #tpu.memory_space<vmem>>, vector<8x256xf32>
    tpu.vector_store %arg8[%c0_6, %c0_7], %7 {strides = array<i32>} : memref<8x256xf32, #tpu.memory_space<vmem>>, vector<8x256xf32>,
    %c0_i32_8 = arith.constant 0 : i32
    %9 = arith.cmpi eq, %arg1, %c0_i32_8 : i32
    %10 = arith.extui %9 : i1 to i32
    %c0_i32_9 = arith.constant 0 : i32
    %11 = arith.cmpi ne, %10, %c0_i32_9 : i32
    scf.if %11 {
      %c0_10 = arith.constant 0 : index
      %c0_11 = arith.constant 0 : index
      %12 = vector.load %arg8[%c0_10, %c0_11] : memref<8x256xf32, #tpu.memory_space<vmem>>, vector<8x256xf32>
      %13 = vector.extract_strided_slice %12 {offsets = [0, 0], sizes = [8, 128], strides = [1, 1]} : vector<8x256xf32> to vector<8x128xf32>
      %c0_12 = arith.constant 0 : index
      %c0_13 = arith.constant 0 : index
      %14 = vector.load %arg4[%c0_12, %c0_13] : memref<1x128xf32, #tpu.memory_space<vmem>>, vector<1x128xf32>
      %15 = vector.broadcast %14 : vector<1x128xf32> to vector<8x128xf32>
      %16 = arith.addf %13, %15 : vector<8x128xf32>
      %cst_14 = arith.constant 0.000000e+00 : f32
      %17 = vector.broadcast %cst_14 : f32 to vector<8x128xf32>
      %18 = arith.maximumf %16, %17 : vector<8x128xf32>
      %19 = vector.extract_strided_slice %12 {offsets = [0, 128], sizes = [8, 128], strides = [1, 1]} : vector<8x256xf32> to vector<8x128xf32>
      %c0_15 = arith.constant 0 : index
      %c0_16 = arith.constant 0 : index
      %20 = vector.load %arg5[%c0_15, %c0_16] : memref<128x128xf32, #tpu.memory_space<vmem>>, vector<128x128xf32>
      %cst_17 = arith.constant dense<0.000000e+00> : vector<8x128xf32>
      %21 = tpu.matmul %18, %20, %cst_17 {dimension_numbers = #tpu.dot_dimension_numbers<[1], [0], [0], [1], [0, 0, 1, 1], [], []>} : vector<8x128xf32>, vector<128x128xf32>, vector<8x128xf32> -> vector<8x128xf32>
      %22 = arith.addf %21, %19 : vector<8x128xf32>
      %c0_18 = arith.constant 0 : index
      %c0_19 = arith.constant 0 : index
      %23 = vector.load %arg6[%c0_18, %c0_19] : memref<1x128xf32, #tpu.memory_space<vmem>>, vector<1x128xf32>
      %24 = vector.broadcast %23 : vector<1x128xf32> to vector<8x128xf32>
      %25 = arith.addf %22, %24 : vector<8x128xf32>
      %c0_20 = arith.constant 0 : index
      %c0_21 = arith.constant 0 : index
      %26 = vector.load %arg7[%c0_20, %c0_21] : memref<8x128xf32, #tpu.memory_space<vmem>>, vector<8x128xf32>
      tpu.vector_store %arg7[%c0_20, %c0_21], %25 {strides = array<i32>} : memref<8x128xf32, #tpu.memory_space<vmem>>, vector<8x128xf32>,
    } else {
    }
    return
  }
  func.func @transform_0(%arg0: i32, %arg1: i32) -> (i32, i32) {
    %c0_i32 = arith.constant 0 : i32
    return %arg0, %arg1 : i32, i32
  }
  func.func @transform_1(%arg0: i32, %arg1: i32) -> (i32, i32) {
    %c0_i32 = arith.constant 0 : i32
    %c0_i32_0 = arith.constant 0 : i32
    return %arg1, %c0_i32 : i32, i32
  }
  func.func @transform_2(%arg0: i32, %arg1: i32) -> (i32, i32) {
    %c0_i32 = arith.constant 0 : i32
    %c0_i32_0 = arith.constant 0 : i32
    %c0_i32_1 = arith.constant 0 : i32
    return %c0_i32, %c0_i32_0 : i32, i32
  }
  func.func @transform_3(%arg0: i32, %arg1: i32) -> (i32, i32) {
    %c0_i32 = arith.constant 0 : i32
    %c0_i32_0 = arith.constant 0 : i32
    %c0_i32_1 = arith.constant 0 : i32
    return %c0_i32, %c0_i32_0 : i32, i32
  }
  func.func @transform_4(%arg0: i32, %arg1: i32) -> (i32, i32) {
    %c0_i32 = arith.constant 0 : i32
    %c0_i32_0 = arith.constant 0 : i32
    %c0_i32_1 = arith.constant 0 : i32
    return %c0_i32, %c0_i32_0 : i32, i32
  }
  func.func @transform_5(%arg0: i32, %arg1: i32) -> (i32, i32) {
    %c0_i32 = arith.constant 0 : i32
    %c0_i32_0 = arith.constant 0 : i32
    return %arg0, %c0_i32 : i32, i32
  }
}

</mosaic_0001>

<bundles_post_ra>
// kernel: tpu_custom_call.1
= control target key start
LH: loop header
LB: loop body
LE: loop exit
PB: predicated region body
PF: predicated region fallthrough
CT: control target
= control target key end

     0   :  { %10 = vsyncpa [#allocation4], 0  ;;  %s621_s0 = inlined_call_operand.hbm [shape: f32[8,128], index: 0, kind: input, shape index: {}]   ;;  %s622_s1 = inlined_call_operand.hbm [shape: f32[128,256], index: 1, kind: input, shape index: {}]   ;;  %s623_s2 = inlined_call_operand.vmem [shape: f32[1,128], index: 2, kind: input, shape index: {}]   ;;  %s624_s3 = inlined_call_operand.hbm [shape: f32[128,128], index: 3, kind: input, shape index: {}]   ;;  %s625_s4 = inlined_call_operand.vmem [shape: f32[1,128], index: 4, kind: input, shape index: {}]   ;;  %s626_s5 = inlined_call_operand.hbm [shape: f32[8,128], index: 5, kind: output, shape index: {}]  }
   0x1   :  { %11 = vsyncpa [#allocation7], 0 }
   0x2   :  { %12 = vsyncpa [#allocation5], 0  ;;  %s516_s18 = smov [#allocation6]   ;;  %s422_s22 = scalar_lea.hbm %s622_s1, 4096 }
   0x3   :  { %s28_s19 = sshll.u32 %s516_s18, 4  ;;  %p423_p0 = scmp.ne.s32.totalorder %s622_s1, %s422_s22  ;;  %s29_s19 = int_to_ptr.vmem [resolvable:$true] %s28_s19 }
   0x4   :  { %p426_p1 = scmp.lt.u32.totalorder %s422_s22, %s622_s1 }
   0x6   :  { %p428_p2 = pnand %p426_p1, %p423_p0 }
   0x8   :  { %431 = shalt.err (!%p428_p2)
}
   0x9   :  { %s432_s27 = scalar_lea.vmem %s29_s19, 4096  ;;  %p437_p4 = scmp.lt.s32.totalorder %s29_s19, %s29_s19 }
   0xa   :  { %p433_p3 = scmp.ne.s32.totalorder %s29_s19, %s432_s27  ;;  %p438_p5 = scmp.lt.s32.totalorder %s432_s27, %s432_s27 }
   0xc   :  { %p439_p6 = por %p438_p5, %p437_p4 }
   0xe   :  { %p440_p7 = pnand %p439_p6, %p433_p3 }
  0x10   :  { %443 = shalt.err (!%p440_p7)
}
  0x11   :  { %s517_s28 = smov 256   ;;  %s518_s29 = smov 16  }
  0x12   :  { %34 = dma.hbm_to_vmem [thread:$0]  %s622_s1, 4096, %s29_s19, [#allocation7], %s517_s28, %s517_s28, %s518_s29  }
  0x13   :  { %s519_s7 = smov [#allocation3]   ;;  %s520_s9 = smov [#allocation8]  }
  0x14   :  { %s19_s8 = sshll.u32 %s519_s7, 4  ;;  %s42_s10 = sshll.u32 %s520_s9, 4  ;;  %s20_s8 = int_to_ptr.vmem [resolvable:$true] %s19_s8  ;;  %s43_s10 = int_to_ptr.vmem [resolvable:$true] %s42_s10 }
  0x15   :  { %s444_s13 = scalar_lea.hbm %s621_s0, 128 }
  0x16   :  { %p445_p8 = scmp.ne.s32.totalorder %s621_s0, %s444_s13  ;;  %p448_p9 = scmp.lt.u32.totalorder %s444_s13, %s621_s0 }
  0x18   :  { %p450_p10 = pnand %p448_p9, %p445_p8 }
  0x1a   :  { %453 = shalt.err (!%p450_p10)
}
  0x1b   :  { %s454_s1 = scalar_lea.vmem %s20_s8, 128  ;;  %p459_p12 = scmp.lt.s32.totalorder %s20_s8, %s20_s8 }
  0x1c   :  { %p455_p11 = scmp.ne.s32.totalorder %s20_s8, %s454_s1  ;;  %p460_p13 = scmp.lt.s32.totalorder %s454_s1, %s454_s1 }
  0x1e   :  { %p461_p0 = por %p460_p13, %p459_p12 }
  0x20   :  { %p462_p1 = pnand %p461_p0, %p455_p11 }
  0x22   :  { %465 = shalt.err (!%p462_p1)
}
  0x23   :  { %22 = dma.hbm_to_vmem [thread:$0]  %s621_s0, 128, %s20_s8, [#allocation4]  }
  0x24   :  { %s466_s22 = scalar_lea.hbm %s624_s3, 2048 }
  0x25   :  { %p467_p2 = scmp.ne.s32.totalorder %s624_s3, %s466_s22  ;;  %p470_p3 = scmp.lt.u32.totalorder %s466_s22, %s624_s3 }
  0x27   :  { %p472_p4 = pnand %p470_p3, %p467_p2 }
  0x29   :  { %475 = shalt.err (!%p472_p4)
}
  0x2a   :  { %s476_s27 = scalar_lea.vmem %s43_s10, 2048  ;;  %p481_p6 = scmp.lt.s32.totalorder %s43_s10, %s43_s10 }
  0x2b   :  { %p477_p5 = scmp.ne.s32.totalorder %s43_s10, %s476_s27  ;;  %p482_p7 = scmp.lt.s32.totalorder %s476_s27, %s476_s27 }
  0x2d   :  { %p483_p8 = por %p482_p7, %p481_p6 }
  0x2f   :  { %p484_p9 = pnand %p483_p8, %p477_p5 }
  0x31   :  { %487 = shalt.err (!%p484_p9)
}
  0x32   :  { %s521_s0 = smov 128   ;;  %s522_s28 = smov 8  }
  0x33   :  { %48 = dma.hbm_to_vmem [thread:$0]  %s624_s3, 2048, %s43_s10, [#allocation7], %s521_s0, %s521_s0, %s522_s28  }
  0x34   :  { %510 = dma.done.wait [#allocation4], 128  }
  0x35   :  { %511 = vsyncadd [#allocation4], 4294967168 }
  0x36   :  { %512 = dma.done.wait [#allocation7], 6144  }
  0x37   :  { %513 = vsyncadd [#allocation7], 4294961152  ;;  %v523_v0 = vmov 0.0   ;;  %v524_v1 = vmov 0.0|0.0   ;;  %v70_v2 = vld [vmem:[#allocation6 + $0x8] sm:$0xff]  ;;  %v72_v3 = vld [vmem:[#allocation6 + $0x18] sm:$0xff] }
  0x38   :  { %165 = vmatprep.mubr.f32.mxu0 %v523_v0  ;;  %387 = vmatprep.subr.bf16.mxu1 %v524_v1  ;;  %v69_v4 = vld [vmem:[#allocation6] sm:$0xff]  ;;  %v355_v5 = vpack.c.bf16 %v72_v3, %v70_v2  ;;  %v71_v6 = vld [vmem:[#allocation6 + $0x10] sm:$0xff]  ;;  %v74_v7 = vld [vmem:[#allocation6 + $0x28] sm:$0xff]  ;;  %vm525_vm0 = vmmov 0   ;;  %s526_s9 = smov [#allocation9]  }
  0x39   :  { %v76_v8 = vld [vmem:[#allocation6 + $0x38] sm:$0xff]  ;;  %v357_v9 = vpack.c.bf16 %v71_v6, %v69_v4  ;;  %v73_v11 = vld [vmem:[#allocation6 + $0x20] sm:$0xff]  ;;  %v75_v12 = vld [vmem:[#allocation6 + $0x30] sm:$0xff]  ;;  %352 = vmatprep.mubr.msk.f32.mxu1 %vm525_vm0, %v523_v0  ;;  %s291_s10 = sshll.u32 %s526_s9, 4  ;;  %s292_s10 = int_to_ptr.vmem [resolvable:$true] %s291_s10 }
  0x3a   :  { %v359_v10 = vpack.c.bf16 %v76_v8, %v74_v7  ;;  %v78_v13 = vld [vmem:[#allocation6 + $0x48] sm:$0xff]  ;;  %356 = vmatprep.subr.bf16.mxu0 %v355_v5  ;;  %v80_v14 = vld [vmem:[#allocation6 + $0x58] sm:$0xff]  ;;  %v361_v15 = vpack.c.bf16 %v75_v12, %v73_v11  ;;  %v77_v17 = vld [vmem:[#allocation6 + $0x40] sm:$0xff]  ;;  %s488_s11 = scalar_lea.vmem %s292_s10, 128  ;;  %p493_p11 = scmp.lt.s32.totalorder %s292_s10, %s292_s10 }
  0x3b   :  { %358 = vmatpush1.bf16.msra.mxu0 %v357_v9  ;;  %v363_v16 = vpack.c.bf16 %v80_v14, %v78_v13  ;;  %v79_v18 = vld [vmem:[#allocation6 + $0x50] sm:$0xff]  ;;  %v82_v19 = vld [vmem:[#allocation6 + $0x68] sm:$0xff]  ;;  %v84_v20 = vld [vmem:[#allocation6 + $0x78] sm:$0xff]  ;;  %p489_p10 = scmp.ne.s32.totalorder %s292_s10, %s488_s11  ;;  %p494_p12 = scmp.lt.s32.totalorder %s488_s11, %s488_s11 }
  0x3c   :  { %360 = vmatprep.subr.bf16.mxu0 %v359_v10  ;;  %v365_v21 = vpack.c.bf16 %v79_v18, %v77_v17  ;;  %v367_v22 = vpack.c.bf16 %v84_v20, %v82_v19  ;;  %v81_v23 = vld [vmem:[#allocation6 + $0x60] sm:$0xff]  ;;  %v83_v24 = vld [vmem:[#allocation6 + $0x70] sm:$0xff]  ;;  %v86_v25 = vld [vmem:[#allocation6 + $0x88] sm:$0xff] }
  0x3d   :  { %v88_v26 = vld [vmem:[#allocation6 + $0x98] sm:$0xff]  ;;  %v190_v27 = vld [vmem:[#allocation8] sm:$0xff]  ;;  %v191_v28 = vld [vmem:[#allocation8 + $0x8] sm:$0xff]  ;;  %v369_v30 = vpack.c.bf16 %v83_v24, %v81_v23  ;;  %p495_p13 = por %p494_p12, %p493_p11 }
  0x3e   :  { %v192_v29 = vld [vmem:[#allocation8 + $0x10] sm:$0xff]  ;;  %v388_v31 = vpack.c.bf16 %v191_v28, %v190_v27  ;;  %v193_v32 = vld [vmem:[#allocation8 + $0x18] sm:$0xff]  ;;  %v371_v33 = vpack.c.bf16 %v88_v26, %v86_v25  ;;  %v85_v34 = vld [vmem:[#allocation6 + $0x80] sm:$0xff] }
  0x3f   :  { %362 = vmatpush1.bf16.msra.mxu0 %v361_v15  ;;  %v87_v35 = vld [vmem:[#allocation6 + $0x90] sm:$0xff]  ;;  %v90_v36 = vld [vmem:[#allocation6 + $0xa8] sm:$0xff]  ;;  %v92_v37 = vld [vmem:[#allocation6 + $0xb8] sm:$0xff]  ;;  %v391_v38 = vpack.c.bf16 %v193_v32, %v192_v29  ;;  %p496_p0 = pnand %p495_p13, %p489_p10 }
  0x40   :  { %364 = vmatprep.subr.bf16.mxu0 %v363_v16  ;;  %389 = vmatpush3.bf16.msra.mxu1 %v388_v31  ;;  %v194_v39 = vld [vmem:[#allocation8 + $0x20] sm:$0xff]  ;;  %v195_v40 = vld [vmem:[#allocation8 + $0x28] sm:$0xff]  ;;  %v373_v41 = vpack.c.bf16 %v87_v35, %v85_v34  ;;  %v375_v42 = vpack.c.bf16 %v92_v37, %v90_v36  ;;  %v91_v44 = vld [vmem:[#allocation6 + $0xb0] sm:$0xff] }
  0x41   :  { %390 = vmatprep.subr.bf16.mxu1 %v524_v1  ;;  %v89_v43 = vld [vmem:[#allocation6 + $0xa0] sm:$0xff]  ;;  %v94_v45 = vld [vmem:[#allocation6 + $0xc8] sm:$0xff]  ;;  %v96_v46 = vld [vmem:[#allocation6 + $0xd8] sm:$0xff]  ;;  %v394_v47 = vpack.c.bf16 %v195_v40, %v194_v39 }
  0x42   :  { %v196_v48 = vld [vmem:[#allocation8 + $0x30] sm:$0xff]  ;;  %v197_v49 = vld [vmem:[#allocation8 + $0x38] sm:$0xff]  ;;  %v377_v50 = vpack.c.bf16 %v91_v44, %v89_v43  ;;  %v379_v51 = vpack.c.bf16 %v96_v46, %v94_v45  ;;  %v93_v52 = vld [vmem:[#allocation6 + $0xc0] sm:$0xff] }
  0x43   :  { %366 = vmatpush1.bf16.msra.mxu0 %v365_v21  ;;  %v95_v53 = vld [vmem:[#allocation6 + $0xd0] sm:$0xff]  ;;  %v98_v54 = vld [vmem:[#allocation6 + $0xe8] sm:$0xff]  ;;  %v100_v55 = vld [vmem:[#allocation6 + $0xf8] sm:$0xff]  ;;  %v397_v56 = vpack.c.bf16 %v197_v49, %v196_v48 }
  0x44   :  { %368 = vmatprep.subr.bf16.mxu0 %v367_v22  ;;  %392 = vmatpush3.bf16.msra.mxu1 %v391_v38  ;;  %v198_v57 = vld [vmem:[#allocation8 + $0x40] sm:$0xff]  ;;  %v199_v58 = vld [vmem:[#allocation8 + $0x48] sm:$0xff]  ;;  %v381_v59 = vpack.c.bf16 %v95_v53, %v93_v52  ;;  %v383_v60 = vpack.c.bf16 %v100_v55, %v98_v54  ;;  %v99_v62 = vld [vmem:[#allocation6 + $0xf0] sm:$0xff] }
  0x45   :  { %393 = vmatprep.subr.bf16.mxu1 %v524_v1  ;;  %v97_v61 = vld [vmem:[#allocation6 + $0xe0] sm:$0xff]  ;;  %v400_v63 = vpack.c.bf16 %v199_v58, %v198_v57  ;;  %v200_v2 = vld [vmem:[#allocation8 + $0x50] sm:$0xff]  ;;  %v201_v3 = vld [vmem:[#allocation8 + $0x58] sm:$0xff] }
  0x46   :  { %v385_v4 = vpack.c.bf16 %v99_v62, %v97_v61  ;;  %v403_v5 = vpack.c.bf16 %v201_v3, %v200_v2  ;;  %v202_v6 = vld [vmem:[#allocation8 + $0x60] sm:$0xff]  ;;  %v203_v7 = vld [vmem:[#allocation8 + $0x68] sm:$0xff]  ;;  %v66_v8 = vld [vmem:[#allocation3] sm:$0xff] }
  0x47   :  { %370 = vmatpush1.bf16.msra.mxu0 %v369_v30  ;;  %v406_v9 = vpack.c.bf16 %v203_v7, %v202_v6  ;;  %v204_v10 = vld [vmem:[#allocation8 + $0x70] sm:$0xff]  ;;  %v205_v11 = vld [vmem:[#allocation8 + $0x78] sm:$0xff] }
  0x48   :  { %372 = vmatprep.subr.bf16.mxu0 %v371_v33  ;;  %395 = vmatpush3.bf16.msra.mxu1 %v394_v47  ;;  %v409_v12 = vpack.c.bf16 %v205_v11, %v204_v10  ;;  %v301_v13 = vld [vmem:[%s623_s2] ss:$0 sm:$0xff] }
  0x49   :  { %396 = vmatprep.subr.bf16.mxu1 %v524_v1 }
  0x4b   :  { %374 = vmatpush1.bf16.msra.mxu0 %v373_v41 }
  0x4c   :  { %376 = vmatprep.subr.bf16.mxu0 %v375_v42  ;;  %398 = vmatpush3.bf16.msra.mxu1 %v397_v56 }
  0x4d   :  { %399 = vmatprep.subr.bf16.mxu1 %v524_v1 }
  0x4f   :  { %378 = vmatpush1.bf16.msra.mxu0 %v377_v50 }
  0x50   :  { %380 = vmatprep.subr.bf16.mxu0 %v379_v51  ;;  %401 = vmatpush3.bf16.msra.mxu1 %v400_v63 }
  0x51   :  { %402 = vmatprep.subr.bf16.mxu1 %v524_v1 }
  0x53   :  { %382 = vmatpush1.bf16.msra.mxu0 %v381_v59 }
  0x54   :  { %384 = vmatprep.subr.bf16.mxu0 %v383_v60  ;;  %404 = vmatpush3.bf16.msra.mxu1 %v403_v5 }
  0x55   :  { %405 = vmatprep.subr.bf16.mxu1 %v524_v1 }
  0x57   :  { %386 = vmatpush1.bf16.msra.mxu0 %v385_v4 }
  0x58   :  { %407 = vmatpush3.bf16.msra.mxu1 %v406_v9 }
  0x59   :  { %408 = vmatprep.subr.bf16.mxu1 %v524_v1  ;;  %v302_v1 = vld [vmem:[%s625_s4] ss:$0 sm:$0xff] }
  0x5a   :  { %166 = vmatmul.mubr.f32.vlgmr.msra.gmra.mrb[0].mxu0 %v66_v8 }
  0x5c   :  { %410 = vmatpush3.bf16.msra.mxu1 %v409_v12 }
 0x12d   :  { %v167_v14 = vpop.f32.mrb[0].mxu0 }
 0x12e   :  { %v188_v15 = vadd.f32 %v301_v13, %v167_v14  ;;  %v169_v16 = vpop.f32.mrb[1].mxu0 }
 0x130   :  { %v189_v17 = vmax.f32 %v188_v15, 0.0 }
 0x132   :  { %353 = vmatmul.mubr.f32.vlgmr.msra.gmra.mrb[0].mxu1 %v189_v17 }
 0x205   :  { %v272_v18 = vpop.f32.mrb[0].mxu1 }
 0x206   :  { %v273_v19 = vadd.f32 %v272_v18, %v169_v16  ;;  %v354_v20 = vpop.f32.mrb[1].mxu1 }
 0x208   :  { %v283_v21 = vadd.f32 %v302_v1, %v273_v19 }
 0x20a   :  { %284 = vst [vmem:[#allocation9] sm:$0xff] %v283_v21 }
 0x20b   :  { %499 = shalt.err (!%p496_p0)
}
 0x20c   :  { %s500_s13 = scalar_lea.hbm %s626_s5, 128 }
 0x20d   :  { %p501_p1 = scmp.ne.s32.totalorder %s626_s5, %s500_s13  ;;  %p504_p2 = scmp.lt.u32.totalorder %s500_s13, %s626_s5 }
 0x20f   :  { %p506_p3 = pnand %p504_p2, %p501_p1 }
 0x211   :  { %509 = shalt.err (!%p506_p3)
}
 0x212   :  { %294 = dma.vmem_to_hbm [thread:$0]  %s292_s10, 128, %s626_s5, [#allocation5]  }
 0x213   :  { %514 = dma.done.wait [#allocation5], 128  }
 0x214   :  { %515 = vsyncadd [#allocation5], 4294967168 }
 0x215   :  { %298 = vsyncpa [#allocation4], 1 }
 0x216   :  { %299 = vsyncpa [#allocation7], 1 }
 0x217   :  { %300 = vsyncpa [#allocation5], 1 }

// kernel: tpu_custom_call.1
= control target key start
LH: loop header
LB: loop body
LE: loop exit
PB: predicated region body
PF: predicated region fallthrough
CT: control target
= control target key end

     0   :  { %10 = vsyncpa [#allocation4], 0  ;;  %s621_s0 = inlined_call_operand.hbm [shape: f32[8,128], index: 0, kind: input, shape index: {}]   ;;  %s622_s1 = inlined_call_operand.hbm [shape: f32[128,256], index: 1, kind: input, shape index: {}]   ;;  %s623_s2 = inlined_call_operand.vmem [shape: f32[1,128], index: 2, kind: input, shape index: {}]   ;;  %s624_s3 = inlined_call_operand.hbm [shape: f32[128,128], index: 3, kind: input, shape index: {}]   ;;  %s625_s4 = inlined_call_operand.vmem [shape: f32[1,128], index: 4, kind: input, shape index: {}]   ;;  %s626_s5 = inlined_call_operand.hbm [shape: f32[8,128], index: 5, kind: output, shape index: {}]  }
   0x1   :  { %11 = vsyncpa [#allocation7], 0 }
   0x2   :  { %12 = vsyncpa [#allocation5], 0  ;;  %s516_s18 = smov [#allocation6]   ;;  %s422_s22 = scalar_lea.hbm %s622_s1, 4096 }
   0x3   :  { %s28_s19 = sshll.u32 %s516_s18, 4  ;;  %p423_p0 = scmp.ne.s32.totalorder %s622_s1, %s422_s22  ;;  %s29_s19 = int_to_ptr.vmem [resolvable:$true] %s28_s19 }
   0x4   :  { %p426_p1 = scmp.lt.u32.totalorder %s422_s22, %s622_s1 }
   0x6   :  { %p428_p2 = pnand %p426_p1, %p423_p0 }
   0x8   :  { %431 = shalt.err (!%p428_p2)
}
   0x9   :  { %s432_s27 = scalar_lea.vmem %s29_s19, 4096  ;;  %p437_p4 = scmp.lt.s32.totalorder %s29_s19, %s29_s19 }
   0xa   :  { %p433_p3 = scmp.ne.s32.totalorder %s29_s19, %s432_s27  ;;  %p438_p5 = scmp.lt.s32.totalorder %s432_s27, %s432_s27 }
   0xc   :  { %p439_p6 = por %p438_p5, %p437_p4 }
   0xe   :  { %p440_p7 = pnand %p439_p6, %p433_p3 }
  0x10   :  { %443 = shalt.err (!%p440_p7)
}
  0x11   :  { %s517_s28 = smov 256   ;;  %s518_s29 = smov 16  }
  0x12   :  { %34 = dma.hbm_to_vmem [thread:$0]  %s622_s1, 4096, %s29_s19, [#allocation7], %s517_s28, %s517_s28, %s518_s29  }
  0x13   :  { %s519_s7 = smov [#allocation3]   ;;  %s520_s9 = smov [#allocation8]  }
  0x14   :  { %s19_s8 = sshll.u32 %s519_s7, 4  ;;  %s42_s10 = sshll.u32 %s520_s9, 4  ;;  %s20_s8 = int_to_ptr.vmem [resolvable:$true] %s19_s8  ;;  %s43_s10 = int_to_ptr.vmem [resolvable:$true] %s42_s10 }
  0x15   :  { %s444_s13 = scalar_lea.hbm %s621_s0, 128 }
  0x16   :  { %p445_p8 = scmp.ne.s32.totalorder %s621_s0, %s444_s13  ;;  %p448_p9 = scmp.lt.u32.totalorder %s444_s13, %s621_s0 }
  0x18   :  { %p450_p10 = pnand %p448_p9, %p445_p8 }
  0x1a   :  { %453 = shalt.err (!%p450_p10)
}
  0x1b   :  { %s454_s1 = scalar_lea.vmem %s20_s8, 128  ;;  %p459_p12 = scmp.lt.s32.totalorder %s20_s8, %s20_s8 }
  0x1c   :  { %p455_p11 = scmp.ne.s32.totalorder %s20_s8, %s454_s1  ;;  %p460_p13 = scmp.lt.s32.totalorder %s454_s1, %s454_s1 }
  0x1e   :  { %p461_p0 = por %p460_p13, %p459_p12 }
  0x20   :  { %p462_p1 = pnand %p461_p0, %p455_p11 }
  0x22   :  { %465 = shalt.err (!%p462_p1)
}
  0x23   :  { %22 = dma.hbm_to_vmem [thread:$0]  %s621_s0, 128, %s20_s8, [#allocation4]  }
  0x24   :  { %s466_s22 = scalar_lea.hbm %s624_s3, 2048 }
  0x25   :  { %p467_p2 = scmp.ne.s32.totalorder %s624_s3, %s466_s22  ;;  %p470_p3 = scmp.lt.u32.totalorder %s466_s22, %s624_s3 }
  0x27   :  { %p472_p4 = pnand %p470_p3, %p467_p2 }
  0x29   :  { %475 = shalt.err (!%p472_p4)
}
  0x2a   :  { %s476_s27 = scalar_lea.vmem %s43_s10, 2048  ;;  %p481_p6 = scmp.lt.s32.totalorder %s43_s10, %s43_s10 }
  0x2b   :  { %p477_p5 = scmp.ne.s32.totalorder %s43_s10, %s476_s27  ;;  %p482_p7 = scmp.lt.s32.totalorder %s476_s27, %s476_s27 }
  0x2d   :  { %p483_p8 = por %p482_p7, %p481_p6 }
  0x2f   :  { %p484_p9 = pnand %p483_p8, %p477_p5 }
  0x31   :  { %487 = shalt.err (!%p484_p9)
}
  0x32   :  { %s521_s0 = smov 128   ;;  %s522_s28 = smov 8  }
  0x33   :  { %48 = dma.hbm_to_vmem [thread:$0]  %s624_s3, 2048, %s43_s10, [#allocation7], %s521_s0, %s521_s0, %s522_s28  }
  0x34   :  { %510 = dma.done.wait [#allocation4], 128  }
  0x35   :  { %511 = vsyncadd [#allocation4], 4294967168 }
  0x36   :  { %512 = dma.done.wait [#allocation7], 6144  }
  0x37   :  { %513 = vsyncadd [#allocation7], 4294961152  ;;  %v523_v0 = vmov 0.0   ;;  %v524_v1 = vmov 0.0|0.0   ;;  %v70_v2 = vld [vmem:[#allocation6 + $0x8] sm:$0xff]  ;;  %v72_v3 = vld [vmem:[#allocation6 + $0x18] sm:$0xff] }
  0x38   :  { %165 = vmatprep.mubr.f32.mxu0 %v523_v0  ;;  %387 = vmatprep.subr.bf16.mxu1 %v524_v1  ;;  %v69_v4 = vld [vmem:[#allocation6] sm:$0xff]  ;;  %v355_v5 = vpack.c.bf16 %v72_v3, %v70_v2  ;;  %v71_v6 = vld [vmem:[#allocation6 + $0x10] sm:$0xff]  ;;  %v74_v7 = vld [vmem:[#allocation6 + $0x28] sm:$0xff]  ;;  %vm525_vm0 = vmmov 0   ;;  %s526_s9 = smov [#allocation9]  }
  0x39   :  { %v76_v8 = vld [vmem:[#allocation6 + $0x38] sm:$0xff]  ;;  %v357_v9 = vpack.c.bf16 %v71_v6, %v69_v4  ;;  %v73_v11 = vld [vmem:[#allocation6 + $0x20] sm:$0xff]  ;;  %v75_v12 = vld [vmem:[#allocation6 + $0x30] sm:$0xff]  ;;  %352 = vmatprep.mubr.msk.f32.mxu1 %vm525_vm0, %v523_v0  ;;  %s291_s10 = sshll.u32 %s526_s9, 4  ;;  %s292_s10 = int_to_ptr.vmem [resolvable:$true] %s291_s10 }
  0x3a   :  { %v359_v10 = vpack.c.bf16 %v76_v8, %v74_v7  ;;  %v78_v13 = vld [vmem:[#allocation6 + $0x48] sm:$0xff]  ;;  %356 = vmatprep.subr.bf16.mxu0 %v355_v5  ;;  %v80_v14 = vld [vmem:[#allocation6 + $0x58] sm:$0xff]  ;;  %v361_v15 = vpack.c.bf16 %v75_v12, %v73_v11  ;;  %v77_v17 = vld [vmem:[#allocation6 + $0x40] sm:$0xff]  ;;  %s488_s11 = scalar_lea.vmem %s292_s10, 128  ;;  %p493_p11 = scmp.lt.s32.totalorder %s292_s10, %s292_s10 }
  0x3b   :  { %358 = vmatpush1.bf16.msra.mxu0 %v357_v9  ;;  %v363_v16 = vpack.c.bf16 %v80_v14, %v78_v13  ;;  %v79_v18 = vld [vmem:[#allocation6 + $0x50] sm:$0xff]  ;;  %v82_v19 = vld [vmem:[#allocation6 + $0x68] sm:$0xff]  ;;  %v84_v20 = vld [vmem:[#allocation6 + $0x78] sm:$0xff]  ;;  %p489_p10 = scmp.ne.s32.totalorder %s292_s10, %s488_s11  ;;  %p494_p12 = scmp.lt.s32.totalorder %s488_s11, %s488_s11 }
  0x3c   :  { %360 = vmatprep.subr.bf16.mxu0 %v359_v10  ;;  %v365_v21 = vpack.c.bf16 %v79_v18, %v77_v17  ;;  %v367_v22 = vpack.c.bf16 %v84_v20, %v82_v19  ;;  %v81_v23 = vld [vmem:[#allocation6 + $0x60] sm:$0xff]  ;;  %v83_v24 = vld [vmem:[#allocation6 + $0x70] sm:$0xff]  ;;  %v86_v25 = vld [vmem:[#allocation6 + $0x88] sm:$0xff] }
  0x3d   :  { %v88_v26 = vld [vmem:[#allocation6 + $0x98] sm:$0xff]  ;;  %v190_v27 = vld [vmem:[#allocation8] sm:$0xff]  ;;  %v191_v28 = vld [vmem:[#allocation8 + $0x8] sm:$0xff]  ;;  %v369_v30 = vpack.c.bf16 %v83_v24, %v81_v23  ;;  %p495_p13 = por %p494_p12, %p493_p11 }
  0x3e   :  { %v192_v29 = vld [vmem:[#allocation8 + $0x10] sm:$0xff]  ;;  %v388_v31 = vpack.c.bf16 %v191_v28, %v190_v27  ;;  %v193_v32 = vld [vmem:[#allocation8 + $0x18] sm:$0xff]  ;;  %v371_v33 = vpack.c.bf16 %v88_v26, %v86_v25  ;;  %v85_v34 = vld [vmem:[#allocation6 + $0x80] sm:$0xff] }
  0x3f   :  { %362 = vmatpush1.bf16.msra.mxu0 %v361_v15  ;;  %v87_v35 = vld [vmem:[#allocation6 + $0x90] sm:$0xff]  ;;  %v90_v36 = vld [vmem:[#allocation6 + $0xa8] sm:$0xff]  ;;  %v92_v37 = vld [vmem:[#allocation6 + $0xb8] sm:$0xff]  ;;  %v391_v38 = vpack.c.bf16 %v193_v32, %v192_v29  ;;  %p496_p0 = pnand %p495_p13, %p489_p10 }
  0x40   :  { %364 = vmatprep.subr.bf16.mxu0 %v363_v16  ;;  %389 = vmatpush3.bf16.msra.mxu1 %v388_v31  ;;  %v194_v39 = vld [vmem:[#allocation8 + $0x20] sm:$0xff]  ;;  %v195_v40 = vld [vmem:[#allocation8 + $0x28] sm:$0xff]  ;;  %v373_v41 = vpack.c.bf16 %v87_v35, %v85_v34  ;;  %v375_v42 = vpack.c.bf16 %v92_v37, %v90_v36  ;;  %v91_v44 = vld [vmem:[#allocation6 + $0xb0] sm:$0xff] }
  0x41   :  { %390 = vmatprep.subr.bf16.mxu1 %v524_v1  ;;  %v89_v43 = vld [vmem:[#allocation6 + $0xa0] sm:$0xff]  ;;  %v94_v45 = vld [vmem:[#allocation6 + $0xc8] sm:$0xff]  ;;  %v96_v46 = vld [vmem:[#allocation6 + $0xd8] sm:$0xff]  ;;  %v394_v47 = vpack.c.bf16 %v195_v40, %v194_v39 }
  0x42   :  { %v196_v48 = vld [vmem:[#allocation8 + $0x30] sm:$0xff]  ;;  %v197_v49 = vld [vmem:[#allocation8 + $0x38] sm:$0xff]  ;;  %v377_v50 = vpack.c.bf16 %v91_v44, %v89_v43  ;;  %v379_v51 = vpack.c.bf16 %v96_v46, %v94_v45  ;;  %v93_v52 = vld [vmem:[#allocation6 + $0xc0] sm:$0xff] }
  0x43   :  { %366 = vmatpush1.bf16.msra.mxu0 %v365_v21  ;;  %v95_v53 = vld [vmem:[#allocation6 + $0xd0] sm:$0xff]  ;;  %v98_v54 = vld [vmem:[#allocation6 + $0xe8] sm:$0xff]  ;;  %v100_v55 = vld [vmem:[#allocation6 + $0xf8] sm:$0xff]  ;;  %v397_v56 = vpack.c.bf16 %v197_v49, %v196_v48 }
  0x44   :  { %368 = vmatprep.subr.bf16.mxu0 %v367_v22  ;;  %392 = vmatpush3.bf16.msra.mxu1 %v391_v38  ;;  %v198_v57 = vld [vmem:[#allocation8 + $0x40] sm:$0xff]  ;;  %v199_v58 = vld [vmem:[#allocation8 + $0x48] sm:$0xff]  ;;  %v381_v59 = vpack.c.bf16 %v95_v53, %v93_v52  ;;  %v383_v60 = vpack.c.bf16 %v100_v55, %v98_v54  ;;  %v99_v62 = vld [vmem:[#allocation6 + $0xf0] sm:$0xff] }
  0x45   :  { %393 = vmatprep.subr.bf16.mxu1 %v524_v1  ;;  %v97_v61 = vld [vmem:[#allocation6 + $0xe0] sm:$0xff]  ;;  %v400_v63 = vpack.c.bf16 %v199_v58, %v198_v57  ;;  %v200_v2 = vld [vmem:[#allocation8 + $0x50] sm:$0xff]  ;;  %v201_v3 = vld [vmem:[#allocation8 + $0x58] sm:$0xff] }
  0x46   :  { %v385_v4 = vpack.c.bf16 %v99_v62, %v97_v61  ;;  %v403_v5 = vpack.c.bf16 %v201_v3, %v200_v2  ;;  %v202_v6 = vld [vmem:[#allocation8 + $0x60] sm:$0xff]  ;;  %v203_v7 = vld [vmem:[#allocation8 + $0x68] sm:$0xff]  ;;  %v66_v8 = vld [vmem:[#allocation3] sm:$0xff] }
  0x47   :  { %370 = vmatpush1.bf16.msra.mxu0 %v369_v30  ;;  %v406_v9 = vpack.c.bf16 %v203_v7, %v202_v6  ;;  %v204_v10 = vld [vmem:[#allocation8 + $0x70] sm:$0xff]  ;;  %v205_v11 = vld [vmem:[#allocation8 + $0x78] sm:$0xff] }
  0x48   :  { %372 = vmatprep.subr.bf16.mxu0 %v371_v33  ;;  %395 = vmatpush3.bf16.msra.mxu1 %v394_v47  ;;  %v409_v12 = vpack.c.bf16 %v205_v11, %v204_v10  ;;  %v301_v13 = vld [vmem:[%s623_s2] ss:$0 sm:$0xff] }
  0x49   :  { %396 = vmatprep.subr.bf16.mxu1 %v524_v1 }
  0x4b   :  { %374 = vmatpush1.bf16.msra.mxu0 %v373_v41 }
  0x4c   :  { %376 = vmatprep.subr.bf16.mxu0 %v375_v42  ;;  %398 = vmatpush3.bf16.msra.mxu1 %v397_v56 }
  0x4d   :  { %399 = vmatprep.subr.bf16.mxu1 %v524_v1 }
  0x4f   :  { %378 = vmatpush1.bf16.msra.mxu0 %v377_v50 }
  0x50   :  { %380 = vmatprep.subr.bf16.mxu0 %v379_v51  ;;  %401 = vmatpush3.bf16.msra.mxu1 %v400_v63 }
  0x51   :  { %402 = vmatprep.subr.bf16.mxu1 %v524_v1 }
  0x53   :  { %382 = vmatpush1.bf16.msra.mxu0 %v381_v59 }
  0x54   :  { %384 = vmatprep.subr.bf16.mxu0 %v383_v60  ;;  %404 = vmatpush3.bf16.msra.mxu1 %v403_v5 }
  0x55   :  { %405 = vmatprep.subr.bf16.mxu1 %v524_v1 }
  0x57   :  { %386 = vmatpush1.bf16.msra.mxu0 %v385_v4 }
  0x58   :  { %407 = vmatpush3.bf16.msra.mxu1 %v406_v9 }
  0x59   :  { %408 = vmatprep.subr.bf16.mxu1 %v524_v1  ;;  %v302_v1 = vld [vmem:[%s625_s4] ss:$0 sm:$0xff] }
  0x5a   :  { %166 = vmatmul.mubr.f32.vlgmr.msra.gmra.mrb[0].mxu0 %v66_v8 }
  0x5c   :  { %410 = vmatpush3.bf16.msra.mxu1 %v409_v12 }
 0x12d   :  { %v167_v14 = vpop.f32.mrb[0].mxu0 }
 0x12e   :  { %v188_v15 = vadd.f32 %v301_v13, %v167_v14  ;;  %v169_v16 = vpop.f32.mrb[1].mxu0 }
 0x130   :  { %v189_v17 = vmax.f32 %v188_v15, 0.0 }
 0x132   :  { %353 = vmatmul.mubr.f32.vlgmr.msra.gmra.mrb[0].mxu1 %v189_v17 }
 0x205   :  { %v272_v18 = vpop.f32.mrb[0].mxu1 }
 0x206   :  { %v273_v19 = vadd.f32 %v272_v18, %v169_v16  ;;  %v354_v20 = vpop.f32.mrb[1].mxu1 }
 0x208   :  { %v283_v21 = vadd.f32 %v302_v1, %v273_v19 }
 0x20a   :  { %284 = vst [vmem:[#allocation9] sm:$0xff] %v283_v21 }
 0x20b   :  { %499 = shalt.err (!%p496_p0)
}
 0x20c   :  { %s500_s13 = scalar_lea.hbm %s626_s5, 128 }
 0x20d   :  { %p501_p1 = scmp.ne.s32.totalorder %s626_s5, %s500_s13  ;;  %p504_p2 = scmp.lt.u32.totalorder %s500_s13, %s626_s5 }
 0x20f   :  { %p506_p3 = pnand %p504_p2, %p501_p1 }
 0x211   :  { %509 = shalt.err (!%p506_p3)
}
 0x212   :  { %294 = dma.vmem_to_hbm [thread:$0]  %s292_s10, 128, %s626_s5, [#allocation5]  }
 0x213   :  { %514 = dma.done.wait [#allocation5], 128  }
 0x214   :  { %515 = vsyncadd [#allocation5], 4294967168 }
 0x215   :  { %298 = vsyncpa [#allocation4], 1 }
 0x216   :  { %299 = vsyncpa [#allocation7], 1 }
 0x217   :  { %300 = vsyncpa [#allocation5], 1 }

</bundles_post_ra>
